<compile_context>
chip_gen: v5e
topology: v5e:2x2
jax: 0.10.0
libtpu: 0.0.40
codegen_flags: <defaults>
</compile_context>

<pallas_src>
import functools

import jax
import jax.numpy as jnp
from jax import lax
from jax.experimental import pallas as pl
from jax.experimental.pallas import tpu as pltpu


KL_EPSILON = 1e-8
TARGET_BETA = 0.1
ANNEALING_STEPS = 10000
NSHARD = 2  # outer "parallel" grid axis; 2x on v7x (2 TCs), harmless on v5e/v6e (1 TC)


def _rna_loss_kernel(logits_ref, tgt_ref, mu_ref, logvar_ref,
                     ce_out_ref, kl_out_ref, acc_ref, *, batch_size):
    """Per-tile CE/KL partial sums, accumulated in SMEM scratch per core."""
    shard = pl.program_id(0)           # "parallel" axis (megacore shard)
    it = pl.program_id(1)              # "arbitrary" reduction axis over batch tiles
    nt = pl.num_programs(1)

    @pl.when(it == 0)
    def _init():
        acc_ref[0] = jnp.float32(0.0)   # running CE sum for this shard
        acc_ref[1] = jnp.float32(0.0)   # running KL sum for this shard

    # Cast to f32 in-kernel (inputs stay bf16/native on the wire -> half the DMA bytes).
    logits = logits_ref[...].astype(jnp.float32)          # (TB, C)
    tgt = tgt_ref[...]                                     # (TB, 1) int32
    tb, c = logits.shape

    # Row-validity mask for batch padding introduced by tiling.
    row0 = (shard * nt + it) * tb
    rows = row0 + lax.broadcasted_iota(jnp.int32, (tb, 1), 0)
    valid = rows < batch_size                              # (TB, 1) bool

    # ---- cross entropy (mean reduction, no weights, no smoothing) ----
    col = lax.broadcasted_iota(jnp.int32, (tb, c), 1)
    m = jnp.max(logits, axis=1, keepdims=True)                            # (TB, 1)
    lse = m + jnp.log(jnp.sum(jnp.exp(logits - m), axis=1, keepdims=True))
    # select-and-reduce instead of materializing a float one-hot
    picked = jnp.sum(jnp.where(col == tgt, logits, 0.0), axis=1, keepdims=True)
    ce_rows = jnp.where(valid, lse - picked, 0.0)                         # (TB, 1)

    # ---- KL divergence: -0.5 * (1 + logvar - mu^2 - (exp(logvar)+eps)) ----
    mu = mu_ref[...].astype(jnp.float32)                   # (TB, D)
    logvar = logvar_ref[...].astype(jnp.float32)           # (TB, D)
    kl_terms = -0.5 * (1.0 + logvar - mu * mu - (jnp.exp(logvar) + KL_EPSILON))
    kl_rows = jnp.where(valid, jnp.sum(kl_terms, axis=1, keepdims=True), 0.0)

    acc_ref[0] += jnp.sum(ce_rows)
    acc_ref[1] += jnp.sum(kl_rows)

    @pl.when(it == nt - 1)
    def _finalize():
        # Lane-dense per-shard partial-sum blocks (wrapper reads [:, 0, 0] and sums).
        ce_out_ref[...] = jnp.full(ce_out_ref.shape, acc_ref[0], dtype=jnp.float32)
        kl_out_ref[...] = jnp.full(kl_out_ref.shape, acc_ref[1], dtype=jnp.float32)


def rna_seq_loss(logits, targets, mu=None, logvar=None, current_step=0,
                 target_beta=TARGET_BETA, annealing_steps=ANNEALING_STEPS):
    """JAX wrapper reproducing RNASeqLoss.forward (default config).

    Returns dict with 'total', 'ce', 'kl_total', 'beta' (all scalars).
    """
    B, C = logits.shape
    if B != targets.shape[0]:
        raise ValueError(
            f"Batch size mismatch: logits {B} vs targets {targets.shape[0]}")

    # beta annealing (scalar glue in plain JAX)
    center = annealing_steps // 2
    steepness = 5.0 / max(annealing_steps, 1)
    ratio = 1.0 / (1.0 + jnp.exp(-steepness * (jnp.float32(current_step) - center)))
    beta = jnp.asarray(target_beta * ratio, jnp.float32)

    has_latent = (mu is not None) and (logvar is not None)
    if not has_latent:
        # Module path without 'mu_rna': KL is identically 0, total = ce.
        mu = jnp.zeros((B, 8), jnp.float32)
        logvar = jnp.zeros((B, 8), jnp.float32)
    D = mu.shape[1]

    # Keep native dtypes (e.g. bf16) for logits/mu/logvar; cast happens in-kernel.
    # TODO(synk): targets as a (B,1) int32 column pads each row to 128 lanes in HBM/DMA;
    #             a lane-dense packing (or scalar prefetch) would save that traffic but
    #             needs a lane->sublane relayout in-kernel.
    targets = targets.astype(jnp.int32).reshape(B, 1)

    itemsize = max(jnp.dtype(logits.dtype).itemsize, jnp.dtype(mu.dtype).itemsize)
    bytes_per_row = (C + 2 * D) * itemsize + 128 * 4   # + padded int32 target column

    # Tile size: biggest multiple of 8 whose double-buffered working set stays well
    # inside the smallest scoped-VMEM budget across generations (v5e 16 MiB default,
    # v7x 32 MiB of 64 MiB physical). Budget ~2 MiB per in-flight tile set.
    budget = 2 << 20
    tb = max(8, min(1024, budget // max(bytes_per_row, 1)))
    tb = (tb // 8) * 8
    rows_per_shard = -(-B // NSHARD)                    # cdiv
    tb = min(tb, ((rows_per_shard + 7) // 8) * 8)
    nt = -(-rows_per_shard // tb)                       # tiles per shard
    b_pad = NSHARD * nt * tb

    pad = b_pad - B
    if pad:
        logits = jnp.pad(logits, ((0, pad), (0, 0)))
        targets = jnp.pad(targets, ((0, pad), (0, 0)))
        mu = jnp.pad(mu, ((0, pad), (0, 0)))
        logvar = jnp.pad(logvar, ((0, pad), (0, 0)))

    # Explicit VMEM limit: double-buffered input tiles + outputs + headroom.
    vmem_limit = int(min(32 << 20, max(8 << 20, 8 * tb * bytes_per_row)))

    kernel = functools.partial(_rna_loss_kernel, batch_size=B)
    row_map = lambda s, i: (s * nt + i, 0)
    part_shape = jax.ShapeDtypeStruct((NSHARD, 8, 128), jnp.float32)

    ce_part, kl_part = pl.pallas_call(
        kernel,
        grid=(NSHARD, nt),
        in_specs=[
            pl.BlockSpec((tb, C), row_map),   # logits  (native dtype)
            pl.BlockSpec((tb, 1), row_map),   # targets (int32 column)
            pl.BlockSpec((tb, D), row_map),   # mu
            pl.BlockSpec((tb, D), row_map),   # logvar
        ],
        out_specs=(
            pl.BlockSpec((1, 8, 128), lambda s, i: (s, 0, 0)),
            pl.BlockSpec((1, 8, 128), lambda s, i: (s, 0, 0)),
        ),
        out_shape=(part_shape, part_shape),
        scratch_shapes=[pltpu.SMEM((2,), jnp.float32)],
        compiler_params=pltpu.CompilerParams(
            dimension_semantics=("parallel", "arbitrary"),
            vmem_limit_bytes=vmem_limit),
    )(logits, targets, mu, logvar)

    # TODO(synk): for vocab-sized C an online logsumexp over a tiled class axis would be
    #             needed; full-C rows are assumed to fit VMEM here (classifier-sized C).

    ce = jnp.sum(ce_part[:, 0, 0]) / jnp.float32(B)
    if has_latent:
        kl = jnp.sum(kl_part[:, 0, 0]) / jnp.float32(B)
        total = ce + beta * kl
    else:
        kl = jnp.float32(0.0)
        total = ce

    return {"total": total, "ce": ce, "kl_total": kl, "beta": beta}


def _reference(logits, targets, mu, logvar, current_step=0,
               target_beta=TARGET_BETA, annealing_steps=ANNEALING_STEPS):
    """Pure-JAX reference for verification (same f32 compute as the kernel)."""
    logits = logits.astype(jnp.float32)
    mu = mu.astype(jnp.float32)
    logvar = logvar.astype(jnp.float32)
    center = annealing_steps // 2
    steepness = 5.0 / max(annealing_steps, 1)
    beta = target_beta / (1.0 + jnp.exp(-steepness * (jnp.float32(current_step) - center)))
    lse = jax.nn.logsumexp(logits, axis=1)
    picked = jnp.take_along_axis(logits, targets[:, None].astype(jnp.int32), axis=1)[:, 0]
    ce = jnp.mean(lse - picked)
    kl_terms = -0.5 * (1.0 + logvar - mu ** 2 - (jnp.exp(logvar) + KL_EPSILON))
    kl = jnp.mean(jnp.sum(kl_terms, axis=1))
    return ce + beta * kl, ce, kl, beta


if __name__ == "__main__":
    key = jax.random.PRNGKey(0)
    B, C, D = 13, 16, 32   # batch (non-multiple of tile to exercise masking), classes, latent

    k1, k2, k3, k4 = jax.random.split(key, 4)
    # bf16 inputs: kernel keeps them bf16 on the wire and casts to f32 in-kernel.
    logits = jax.random.normal(k1, (B, C), jnp.float32).astype(jnp.bfloat16)
    targets = jax.random.randint(k2, (B,), 0, C, jnp.int32)
    mu = (jax.random.normal(k3, (B, D), jnp.float32) * 0.5).astype(jnp.bfloat16)
    logvar = (jax.random.normal(k4, (B, D), jnp.float32) * 0.1).astype(jnp.bfloat16)

    out = rna_seq_loss(logits, targets, mu, logvar, current_step=0)
    jax.block_until_ready(out)

    ref_total, ref_ce, ref_kl, ref_beta = _reference(logits, targets, mu, logvar)
    assert jnp.allclose(out["ce"], ref_ce, rtol=1e-4, atol=1e-5), (out["ce"], ref_ce)
    assert jnp.allclose(out["kl_total"], ref_kl, rtol=1e-4, atol=1e-5), (out["kl_total"], ref_kl)
    assert jnp.allclose(out["total"], ref_total, rtol=1e-4, atol=1e-5), (out["total"], ref_total)
    assert jnp.allclose(out["beta"], ref_beta, rtol=1e-6, atol=1e-8)

    print("KERNEL_OK")
</pallas_src>

<mosaic_0001>
module attributes {stable_mosaic.version = 11 : i64} {
  func.func @_rna_loss_kernel(%arg0: i32, %arg1: i32, %arg2: memref<8x16xbf16, #tpu.memory_space<vmem>>, %arg3: memref<8x1xi32, #tpu.memory_space<vmem>>, %arg4: memref<8x32xbf16, #tpu.memory_space<vmem>>, %arg5: memref<8x32xbf16, #tpu.memory_space<vmem>>, %arg6: memref<1x8x128xf32, #tpu.memory_space<vmem>>, %arg7: memref<1x8x128xf32, #tpu.memory_space<vmem>>, %arg8: memref<2xf32, #tpu.memory_space<smem>>) attributes {dimension_semantics = [#tpu.dimension_semantics<parallel>, #tpu.dimension_semantics<arbitrary>], iteration_bounds = array<i64: 2, 1>, scalar_prefetch = 0 : i64, scratch_operands = 1 : i64, tpu.core_type = #tpu.core_type<tc>, window_params = [{transform_indices = @transform_0, window_bounds = array<i64: 8, 16>}, {transform_indices = @transform_1, window_bounds = array<i64: 8, 1>}, {transform_indices = @transform_2, window_bounds = array<i64: 8, 32>}, {transform_indices = @transform_3, window_bounds = array<i64: 8, 32>}, {transform_indices = @transform_4, window_bounds = array<i64: 1, 8, 128>}, {transform_indices = @transform_5, window_bounds = array<i64: 1, 8, 128>}]} {
    %c0_i32 = arith.constant 0 : i32
    %0 = arith.cmpi eq, %arg1, %c0_i32 : i32
    %1 = arith.extui %0 : i1 to i32
    %c0_i32_0 = arith.constant 0 : i32
    %2 = arith.cmpi ne, %1, %c0_i32_0 : i32
    scf.if %2 {
      %cst_24 = arith.constant 0.000000e+00 : f32
      %c0_25 = arith.constant 0 : index
      %68 = memref.load %arg8[%c0_25] : memref<2xf32, #tpu.memory_space<smem>>
      memref.store %cst_24, %arg8[%c0_25] : memref<2xf32, #tpu.memory_space<smem>>
      %cst_26 = arith.constant 0.000000e+00 : f32
      %c1_27 = arith.constant 1 : index
      %69 = memref.load %arg8[%c1_27] : memref<2xf32, #tpu.memory_space<smem>>
      memref.store %cst_26, %arg8[%c1_27] : memref<2xf32, #tpu.memory_space<smem>>
    } else {
    }
    %c0 = arith.constant 0 : index
    %c0_1 = arith.constant 0 : index
    %3 = vector.load %arg2[%c0, %c0_1] : memref<8x16xbf16, #tpu.memory_space<vmem>>, vector<8x16xbf16>
    %4 = arith.extf %3 : vector<8x16xbf16> to vector<8x16xf32>
    %c0_2 = arith.constant 0 : index
    %c0_3 = arith.constant 0 : index
    %5 = vector.load %arg3[%c0_2, %c0_3] : memref<8x1xi32, #tpu.memory_space<vmem>>, vector<8x1xi32>
    %c1_i32 = arith.constant 1 : i32
    %6 = arith.muli %arg0, %c1_i32 : i32
    %7 = arith.addi %6, %arg1 : i32
    %c8_i32 = arith.constant 8 : i32
    %8 = arith.muli %7, %c8_i32 : i32
    %9 = tpu.iota {dimensions = array<i32: 0>} : vector<8x1xi32>
    %10 = vector.broadcast %8 : i32 to vector<8x1xi32>
    %11 = arith.addi %10, %9 : vector<8x1xi32>
    %c13_i32 = arith.constant 13 : i32
    %12 = vector.broadcast %c13_i32 : i32 to vector<8x1xi32>
    %13 = arith.cmpi slt, %11, %12 : vector<8x1xi32>
    %14 = tpu.iota {dimensions = array<i32: 1>} : vector<8x16xi32>
    %cst = arith.constant dense<0xFF800000> : vector<8xf32>
    %15 = vector.multi_reduction <maximumf>, %4, %cst [1] : vector<8x16xf32> to vector<8xf32>
    %16 = vector.shape_cast %15 : vector<8xf32> to vector<8x1xf32>
    %17 = vector.broadcast %16 : vector<8x1xf32> to vector<8x16xf32>
    %18 = arith.subf %4, %17 : vector<8x16xf32>
    %19 = math.exp %18 : vector<8x16xf32>
    %cst_4 = arith.constant dense<0.000000e+00> : vector<8xf32>
    %20 = vector.multi_reduction <add>, %19, %cst_4 [1] : vector<8x16xf32> to vector<8xf32>
    %21 = vector.shape_cast %20 : vector<8xf32> to vector<8x1xf32>
    %22 = math.log %21 : vector<8x1xf32>
    %23 = arith.addf %16, %22 : vector<8x1xf32>
    %24 = vector.broadcast %5 : vector<8x1xi32> to vector<8x16xi32>
    %25 = arith.cmpi eq, %14, %24 : vector<8x16xi32>
    %cst_5 = arith.constant 0.000000e+00 : f32
    %26 = vector.broadcast %cst_5 : f32 to vector<8x16xf32>
    %27 = arith.select %25, %4, %26 : vector<8x16xi1>, vector<8x16xf32>
    %cst_6 = arith.constant dense<0.000000e+00> : vector<8xf32>
    %28 = vector.multi_reduction <add>, %27, %cst_6 [1] : vector<8x16xf32> to vector<8xf32>
    %29 = vector.shape_cast %28 : vector<8xf32> to vector<8x1xf32>
    %30 = arith.subf %23, %29 : vector<8x1xf32>
    %cst_7 = arith.constant 0.000000e+00 : f32
    %31 = vector.broadcast %cst_7 : f32 to vector<8x1xf32>
    %32 = arith.select %13, %30, %31 : vector<8x1xi1>, vector<8x1xf32>
    %c0_8 = arith.constant 0 : index
    %c0_9 = arith.constant 0 : index
    %33 = vector.load %arg4[%c0_8, %c0_9] : memref<8x32xbf16, #tpu.memory_space<vmem>>, vector<8x32xbf16>
    %34 = arith.extf %33 : vector<8x32xbf16> to vector<8x32xf32>
    %c0_10 = arith.constant 0 : index
    %c0_11 = arith.constant 0 : index
    %35 = vector.load %arg5[%c0_10, %c0_11] : memref<8x32xbf16, #tpu.memory_space<vmem>>, vector<8x32xbf16>
    %36 = arith.extf %35 : vector<8x32xbf16> to vector<8x32xf32>
    %cst_12 = arith.constant 1.000000e+00 : f32
    %37 = vector.broadcast %cst_12 : f32 to vector<8x32xf32>
    %38 = arith.addf %37, %36 : vector<8x32xf32>
    %39 = arith.mulf %34, %34 : vector<8x32xf32>
    %40 = arith.subf %38, %39 : vector<8x32xf32>
    %41 = math.exp %36 : vector<8x32xf32>
    %cst_13 = arith.constant 9.99999993E-9 : f32
    %42 = vector.broadcast %cst_13 : f32 to vector<8x32xf32>
    %43 = arith.addf %41, %42 : vector<8x32xf32>
    %44 = arith.subf %40, %43 : vector<8x32xf32>
    %cst_14 = arith.constant -5.000000e-01 : f32
    %45 = vector.broadcast %cst_14 : f32 to vector<8x32xf32>
    %46 = arith.mulf %45, %44 : vector<8x32xf32>
    %cst_15 = arith.constant dense<0.000000e+00> : vector<8xf32>
    %47 = vector.multi_reduction <add>, %46, %cst_15 [1] : vector<8x32xf32> to vector<8xf32>
    %48 = vector.shape_cast %47 : vector<8xf32> to vector<8x1xf32>
    %cst_16 = arith.constant 0.000000e+00 : f32
    %49 = vector.broadcast %cst_16 : f32 to vector<8x1xf32>
    %50 = arith.select %13, %48, %49 : vector<8x1xi1>, vector<8x1xf32>
    %c0_17 = arith.constant 0 : index
    %51 = memref.load %arg8[%c0_17] : memref<2xf32, #tpu.memory_space<smem>>
    %52 = vector.shape_cast %32 : vector<8x1xf32> to vector<1x8x1xf32>
    %cst_18 = arith.constant dense<0.000000e+00> : vector<1xf32>
    %53 = vector.multi_reduction <add>, %52, %cst_18 [1, 2] : vector<1x8x1xf32> to vector<1xf32>
    %54 = vector.shape_cast %53 : vector<1xf32> to vector<1x1x1xf32>
    %55 = vector.extract %54[0, 0, 0] : f32 from vector<1x1x1xf32>
    %56 = arith.addf %51, %55 : f32
    %c0_19 = arith.constant 0 : index
    %57 = memref.load %arg8[%c0_19] : memref<2xf32, #tpu.memory_space<smem>>
    memref.store %56, %arg8[%c0_19] : memref<2xf32, #tpu.memory_space<smem>>
    %c1 = arith.constant 1 : index
    %58 = memref.load %arg8[%c1] : memref<2xf32, #tpu.memory_space<smem>>
    %59 = vector.shape_cast %50 : vector<8x1xf32> to vector<1x8x1xf32>
    %cst_20 = arith.constant dense<0.000000e+00> : vector<1xf32>
    %60 = vector.multi_reduction <add>, %59, %cst_20 [1, 2] : vector<1x8x1xf32> to vector<1xf32>
    %61 = vector.shape_cast %60 : vector<1xf32> to vector<1x1x1xf32>
    %62 = vector.extract %61[0, 0, 0] : f32 from vector<1x1x1xf32>
    %63 = arith.addf %58, %62 : f32
    %c1_21 = arith.constant 1 : index
    %64 = memref.load %arg8[%c1_21] : memref<2xf32, #tpu.memory_space<smem>>
    memref.store %63, %arg8[%c1_21] : memref<2xf32, #tpu.memory_space<smem>>
    %c0_i32_22 = arith.constant 0 : i32
    %65 = arith.cmpi eq, %arg1, %c0_i32_22 : i32
    %66 = arith.extui %65 : i1 to i32
    %c0_i32_23 = arith.constant 0 : i32
    %67 = arith.cmpi ne, %66, %c0_i32_23 : i32
    scf.if %67 {
      %c0_24 = arith.constant 0 : index
      %68 = memref.load %arg8[%c0_24] : memref<2xf32, #tpu.memory_space<smem>>
      %69 = vector.broadcast %68 : f32 to vector<1x8x128xf32>
      %c0_25 = arith.constant 0 : index
      %c0_26 = arith.constant 0 : index
      %c0_27 = arith.constant 0 : index
      %70 = vector.load %arg6[%c0_25, %c0_26, %c0_27] : memref<1x8x128xf32, #tpu.memory_space<vmem>>, vector<1x8x128xf32>
      tpu.vector_store %arg6[%c0_25, %c0_26, %c0_27], %69 {strides = array<i32>} : memref<1x8x128xf32, #tpu.memory_space<vmem>>, vector<1x8x128xf32>,
      %c1_28 = arith.constant 1 : index
      %71 = memref.load %arg8[%c1_28] : memref<2xf32, #tpu.memory_space<smem>>
      %72 = vector.broadcast %71 : f32 to vector<1x8x128xf32>
      %c0_29 = arith.constant 0 : index
      %c0_30 = arith.constant 0 : index
      %c0_31 = arith.constant 0 : index
      %73 = vector.load %arg7[%c0_29, %c0_30, %c0_31] : memref<1x8x128xf32, #tpu.memory_space<vmem>>, vector<1x8x128xf32>
      tpu.vector_store %arg7[%c0_29, %c0_30, %c0_31], %72 {strides = array<i32>} : memref<1x8x128xf32, #tpu.memory_space<vmem>>, vector<1x8x128xf32>,
    } else {
    }
    return
  }
  func.func @transform_0(%arg0: i32, %arg1: i32) -> (i32, i32) {
    %c1_i32 = arith.constant 1 : i32
    %0 = arith.muli %arg0, %c1_i32 : i32
    %1 = arith.addi %0, %arg1 : i32
    %c0_i32 = arith.constant 0 : i32
    %c0_i32_0 = arith.constant 0 : i32
    return %1, %c0_i32 : i32, i32
  }
  func.func @transform_1(%arg0: i32, %arg1: i32) -> (i32, i32) {
    %c1_i32 = arith.constant 1 : i32
    %0 = arith.muli %arg0, %c1_i32 : i32
    %1 = arith.addi %0, %arg1 : i32
    %c0_i32 = arith.constant 0 : i32
    %c0_i32_0 = arith.constant 0 : i32
    return %1, %c0_i32 : i32, i32
  }
  func.func @transform_2(%arg0: i32, %arg1: i32) -> (i32, i32) {
    %c1_i32 = arith.constant 1 : i32
    %0 = arith.muli %arg0, %c1_i32 : i32
    %1 = arith.addi %0, %arg1 : i32
    %c0_i32 = arith.constant 0 : i32
    %c0_i32_0 = arith.constant 0 : i32
    return %1, %c0_i32 : i32, i32
  }
  func.func @transform_3(%arg0: i32, %arg1: i32) -> (i32, i32) {
    %c1_i32 = arith.constant 1 : i32
    %0 = arith.muli %arg0, %c1_i32 : i32
    %1 = arith.addi %0, %arg1 : i32
    %c0_i32 = arith.constant 0 : i32
    %c0_i32_0 = arith.constant 0 : i32
    return %1, %c0_i32 : i32, i32
  }
  func.func @transform_4(%arg0: i32, %arg1: i32) -> (i32, i32, i32) {
    %c0_i32 = arith.constant 0 : i32
    %c0_i32_0 = arith.constant 0 : i32
    %c0_i32_1 = arith.constant 0 : i32
    return %arg0, %c0_i32, %c0_i32_0 : i32, i32, i32
  }
  func.func @transform_5(%arg0: i32, %arg1: i32) -> (i32, i32, i32) {
    %c0_i32 = arith.constant 0 : i32
    %c0_i32_0 = arith.constant 0 : i32
    %c0_i32_1 = arith.constant 0 : i32
    return %arg0, %c0_i32, %c0_i32_0 : i32, i32, i32
  }
}

</mosaic_0001>

<bundles_post_ra>
// kernel: tpu_custom_call.1
= control target key start
LH: loop header
LB: loop body
LE: loop exit
PB: predicated region body
PF: predicated region fallthrough
CT: control target
= control target key end

     0   :  { %s1064_s0 = inlined_call_operand.vmem [shape: bf16[16,16], index: 0, kind: input, shape index: {}]   ;;  %s1065_s1 = inlined_call_operand.vmem [shape: s32[16,1], index: 1, kind: input, shape index: {}]   ;;  %s1066_s2 = inlined_call_operand.vmem [shape: bf16[16,32], index: 2, kind: input, shape index: {}]   ;;  %s1067_s3 = inlined_call_operand.hbm [shape: bf16[16,32], index: 3, kind: input, shape index: {}]   ;;  %s1068_s4 = inlined_call_operand.hbm [shape: f32[2,8,128], index: 4, kind: output, shape index: {0}]   ;;  %s1069_s5 = inlined_call_operand.hbm [shape: f32[2,8,128], index: 5, kind: output, shape index: {1}]  }
   0x1   :  { %1070 = sst [smem:[#allocation12_spill]] %s1064_s0 }
   0x2   :  { %11 = vsyncpa [#allocation4], 0 }
   0x3   :  { %13 = vsyncpa [#allocation4 + $0x1], 0 }
   0x4   :  { %14 = vsyncpa [#allocation5], 0 }
   0x5   :  { %16 = vsyncpa [#allocation5 + $0x1], 0 }
   0x6   :  { %17 = vsyncpa [#allocation8], 0 }
   0x7   :  { %19 = vsyncpa [#allocation8 + $0x1], 0  ;;  %s900_s18 = smov 0   ;;  %s902_s19 = smov 0  }
   0x8   :  { %s904_s20 = smov 0   ;;  %s906_s21 = smov 0  }
   0x9   :  { %s908_s22 = smov 0   ;;  %s910_s23 = smov 0  }
   0xa LB: > { %s622_s24 = sadd.s32 4294967295, %s867_s23   ;;  %s623_s25 = sadd.s32 4294967294, %s867_s23   ;;  %s867_s23 = sphi %s910_s23, %s25_s23   ;;  %s863_s22 = sphi %s908_s22, %s1080_s22   ;;  %s859_s21 = sphi %s906_s21, %s1079_s21   ;;  %s855_s20 = sphi %s904_s20, %s1078_s20   ;;  %s851_s19 = sphi %s902_s19, %s1077_s19   ;;  %s847_s18 = sphi %s900_s18, %s1076_s18  }
   0xb   : > { %s37_s26 = sadd.s32 1, %s863_s22  ;;  %s130_s27 = sadd.s32 1, %s855_s20 }
   0xc   : > { %p39_p0 = scmp.ge.s32.totalorder %s37_s26, 2  ;;  %p137_p1 = scmp.ne.s32.totalorder %s855_s20, %s851_s19 }
   0xd   : > { %p138_p2 = scmp.eq.s32.totalorder %s867_s23, 0  ;;  %p143_p3 = scmp.ne.s32.totalorder %s851_s19, %s847_s18 }
   0xe   : > { %s1082_s26 = smov (%p39_p0, %s37_s26), 0  ;;  %p144_p5 = scmp.eq.s32.totalorder %s622_s24, 0 }
   0xf   : > { %p941_p4 = por %p138_p2, %p137_p1  ;;  %s127_s29 = ssub.s32 %s863_s22, %s1082_s26 }
  0x10   : > { %p167_p6 = scmp.eq.s32.totalorder %s622_s24, 1  ;;  %p128_p7 = scmp.eq.s32.totalorder %s127_s29, 0 }
  0x11   : > { %p947_p8 = por %p144_p5, %p143_p3  ;;  %p173_p10 = scmp.eq.s32.totalorder %s623_s25, 1 }
  0x12   : > { %p951_p9 = por %p167_p6, %p137_p1  ;;  %p625_p12 = scmp.ge.s32.totalorder %s867_s23, 2 }
  0x13   : > { %s956_s7 = scalar_select %p128_p7, %s855_s20, %s130_s27  }
  0x14   : > { %p958_p11 = por %p173_p10, %p143_p3  ;;  %p665_p13 = scmp.lt.s32.totalorder %s867_s23, 2 }
  0x15   : > { %s246_s9 = sand.u32 1, %s855_s20   ;;  %s627_s11 = sshll.u32 %s863_s22, 2 }
  0x16   : > { %s626_s10 = sshll.u32 %s246_s9, 2  ;;  %s255_s14 = scalar_lea.hbm %s1067_s3, %s627_s11 }
  0x17   : > { %s250_s15 = scalar_lea.vmem [#allocation3], %s626_s10  ;;  %s257_s17 = sshll.u32 %s255_s14, 4  ;;  %s258_s17 = int_to_ptr.hbm [resolvable:$true] %s257_s17 }
  0x18   : > { %s259_s16 = sshll.u32 %s250_s15, 4  ;;  %p655_p0 = pnand %p665_p13, %p941_p4  ;;  %s260_s16 = int_to_ptr.vmem [resolvable:$true] %s259_s16 }
  0x19   : > { %p628_p1 = scmp.ge.s32.totalorder %s867_s23, 1  ;;  %p264_p2 = scmp.lt.s32.totalorder %s867_s23, 3 }
  0x1a   : > { %s247_s24 = scalar_lea.sflag [#allocation4], %s246_s9 }
  0x1b   : > { %657 = dma.hbm_to_vmem [thread:$0]  (!%p655_p0), %s258_s17, 64, %s260_s16, %s247_s24  }
  0x1c   : > { %p265_p3 = pnand %p628_p1, %p264_p2 }
  0x1d   : > { %s974_s25 = sand.u32 (!%p265_p3), 1, %s851_s19  }
  0x1e   : > { %268 = sbr.rel (%p265_p3) target bundleno = 501 (0x1f5), region = 36  ;;  %s629_s27 = sshll.u32 (!%p265_p3), %s974_s25, 2 }
  0x1f   : > { %s271_s29 = scalar_lea.sflag (!%p265_p3), [#allocation4], %s974_s25  ;;  %s274_s10 = scalar_lea.vmem (!%p265_p3), [#allocation3], %s629_s27 }
  0x23   : > { %834 = dma.done.wait (%p947_p8), %s271_s29, 64  }
  0x24   : > { %836 = vsyncadd (%p947_p8), %s271_s29, 4294967232  ;;  %p323_p4 = scmp.lt.s32.totalorder %s859_s21, 1  ;;  %v869_v0 = vmov 0   ;;  %s1075_s0 = sld [smem:[#allocation12_spill]]  ;;  %vm361_vm0 = vcmask 130048   ;;  %vm396_vm1 = vcmask 261120   ;;  %v354_v23 = vlaneseq }
  0x25   : > { %716 = vset.pattern.permute.xlu0 %v869_v0  ;;  %v386_v5 = vld [vmem:[%s274_s10] sm:$0xf]  ;;  %s997_s29 = sshll.u32 %s859_s21, 3  ;;  %vm402_vm4 = vcmask 7168  }
  0x26   : > { %s324_s28 = scalar_select %p323_p4, %s859_s21, 1  ;;  %v387_v6 = vunpack.c.l.bf16 %v386_v5  ;;  %v360_v24 = vand.u32 127, %v354_v23  ;;  %v355_v28 = vshrl.u32 %v354_v23, 7  ;;  %v356_v29 = vstv %s997_s29 }
  0x27   : > { %s630_s21 = sshll.u32 %s974_s25, 3  ;;  %s469_s30 = scalar_lea.hbm %s1069_s5, %s997_s29 }
  0x28   : > { %s632_s9 = sshll.u32 %s324_s28, 2  ;;  %s633_s14 = sshll.u32 %s324_s28, 3  ;;  %v391_v7 = vmul.f32 1.442695, %v387_v6  ;;  %v388_v10 = vadd.f32 1.0, %v387_v6  ;;  %v357_v30 = vadd.s32 %v356_v29, %v355_v28 }
  0x29   : > { %s332_s16 = scalar_lea.vmem %s1065_s1, %s633_s14  ;;  %s338_s27 = scalar_lea.vmem %s1066_s2, %s632_s9 }
  0x2a   : > { %s326_s13 = scalar_lea.vmem %s1075_s0, %s632_s9  ;;  %v351_v4 = vld [vmem:[%s332_s16] sm:$0xff]  ;;  %717 = vpow2.f32 %v391_v7  ;;  %vm358_vm3 = vcmp.lt.s32.totalorder %v357_v30, 13  ;;  %s455_s9 = scalar_lea.hbm %s1068_s4, %s997_s29 }
  0x2b   : > { %v349_v1 = vld [vmem:[%s326_s13] sm:$0xf]  ;;  %s321_s11 = scalar_lea.vmem [#allocation7], %s630_s21  ;;  %s314_s15 = scalar_lea.vmem [#allocation6], %s630_s21 }
  0x2c   : > { %v350_v2 = vunpack.c.l.bf16 %v349_v1  ;;  %v384_v8 = vld [vmem:[%s338_s27] sm:$0xf]  ;;  %s471_s12 = sshll.u32 %s321_s11, 4  ;;  %s457_s16 = sshll.u32 %s314_s15, 4  ;;  %s1009_s12 = int_to_ptr.vmem [resolvable:$true] %s471_s12  ;;  %s458_s16 = int_to_ptr.vmem [resolvable:$true] %s457_s16 }
  0x2d   : > { %v385_v9 = vunpack.c.l.bf16 %v384_v8  ;;  %s459_s17 = sshll.u32 %s455_s9, 4  ;;  %s1011_s24 = sshll.u32 %s469_s30, 4  ;;  %s460_s17 = int_to_ptr.hbm [resolvable:$true] %s459_s17  ;;  %s474_s24 = int_to_ptr.hbm [resolvable:$true] %s1011_s24 }
  0x2e   : > { %v362_v3 = vsel %vm361_vm0, %v350_v2, -inf  ;;  %s440_s28 = scalar_lea.sflag [#allocation5], %s974_s25  ;;  %s767_s29 = sshra.s32 %s460_s17, 4  ;;  %s768_s29 = int_to_ptr.hbm [resolvable:$true] %s767_s29 }
  0x2f   : > { %363 = vmax.xlane.f32.xlu0 %v362_v3  ;;  %v389_v11 = vmul.f32 %v385_v9, %v385_v9  ;;  %s769_s21 = scalar_lea.hbm %s768_s29, 8  ;;  %s773_s14 = scalar_lea.hbm %s1068_s4, 16 }
  0x30   : > { %v718_v12 = vpop.eup %717  ;;  %p770_p5 = scmp.ne.s32.totalorder %s768_s29, %s769_s21  ;;  %p774_p8 = scmp.lt.s32.totalorder %s768_s29, %s1068_s4 }
  0x31   : > { %v390_v13 = vsub.f32 %v388_v10, %v389_v11  ;;  %v393_v14 = vadd.f32 1e-08, %v718_v12  ;;  %p775_p10 = scmp.lt.s32.totalorder %s773_s14, %s769_s21 }
  0x32   : > { %p771_p6 = pnand %p770_p5, %p951_p9 }
  0x33   : > { %v394_v15 = vsub.f32 %v390_v13, %v393_v14  ;;  %p776_p13 = por %p775_p10, %p774_p8 }
  0x34   : > { %p772_p7 = pneg %p771_p6 }
  0x35   : > { %v395_v16 = vmul.f32 -0.5, %v394_v15 }
  0x36   : > { %p777_p0 = pnand %p776_p13, %p772_p7 }
  0x37   : > { %v397_v17 = vsel %vm396_vm1, %v395_v16, 0.0 }
  0x38   : > { %398 = vadd.xlane.f32.xlu2 %v397_v17 }
  0x43   : > { %375 = vperm.xlu0 %716, %v351_v4  }
  0xa2   : > { %v364_v18 = vpop.xlane.xlu0 %363 }
  0xa3   : > { %v365_v19 = vsub.f32 %v350_v2, %v364_v18 }
  0xa5   : > { %v366_v20 = vmul.f32 1.442695, %v365_v19 }
  0xa7   : > { %719 = vpow2.f32 %v366_v20 }
  0xab   : > { %v399_v31 = vpop.xlane.xlu2 %398 }
  0xac   : > { %v400_v32 = vsel %vm358_vm3, %v399_v31, 0.0 }
  0xad   : > { %v720_v21 = vpop.eup %719  ;;  %v417_v33 = vsel %vm402_vm4, %v400_v32, 0.0 }
  0xae   : > { %v368_v22 = vsel %vm361_vm0, %v720_v21, 0.0 }
  0xaf   : > { %369 = vadd.xlane.f32.xlu1 %v368_v22 }
  0xb5   : > { %v376_v25 = vpop.permute.xlu0 %375 }
  0xb6   : > { %vm377_vm2 = vcmp.eq.s32.totalorder %v360_v24, %v376_v25 }
  0xb7   : > { %v378_v26 = vsel %vm377_vm2, %v350_v2, 0.0 }
  0xb8   : > { %v379_v27 = vsel %vm361_vm0, %v378_v26, 0.0 }
  0xb9   : > { %380 = vadd.xlane.f32.xlu1 %v379_v27 }
  0xc1   : > { %418 = vadd.xlane.f32.xlu1 %v417_v33 }
 0x122   : > { %v370_v34 = vpop.xlane.xlu1 %369 }
 0x123   : > { %721 = vlog2.f32 %v370_v34 }
 0x129   : > { %v722_v35 = vpop.eup %721 }
 0x12a   : > { %v372_v36 = vmul.f32 0.6931472, %v722_v35 }
 0x12c   : > { %v373_v37 = vadd.f32 %v372_v36, %v364_v18  ;;  %v381_v38 = vpop.xlane.xlu1 %380 }
 0x12e   : > { %v382_v39 = vsub.f32 %v373_v37, %v381_v38 }
 0x130   : > { %v383_v40 = vsel %vm358_vm3, %v382_v39, 0.0 }
 0x131   : > { %v403_v41 = vsel %vm402_vm4, %v383_v40, 0.0 }
 0x132   : > { %404 = vadd.xlane.f32.xlu2 %v403_v41 }
 0x134   : > { %v419_v42 = vpop.xlane.xlu1 %418 }
 0x135   : > { %v420_v43 = vrot.slane %v419_v42, 4 }
 0x137   : > { %v421_v44 = vadd.f32 %v420_v43, %v419_v42 }
 0x139   : > { %v422_v45 = vrot.slane %v421_v44, 2 }
 0x13b   : > { %v423_v49 = vadd.f32 %v422_v45, %v421_v44 }
 0x13d   : > { %v424_v52 = vrot.slane %v423_v49, 1 }
 0x13f   : > { %v425_v55 = vadd.f32 %v424_v52, %v423_v49 }
 0x1a5   : > { %v405_v46 = vpop.xlane.xlu2 %404 }
 0x1a6   : > { %v406_v47 = vrot.slane %v405_v46, 4 }
 0x1a8   : > { %v407_v48 = vadd.f32 %v406_v47, %v405_v46 }
 0x1aa   : > { %v408_v50 = vrot.slane %v407_v48, 2 }
 0x1ac   : > { %v409_v51 = vadd.f32 %v408_v50, %v407_v48 }
 0x1ae   : > { %v410_v53 = vrot.slane %v409_v51, 1 }
 0x1b0   : > { %v411_v54 = vadd.f32 %v410_v53, %v409_v51 }
 0x1b2   : > { %644 = vpush %v411_v54 }
 0x1b3   : > { %646 = vpush %v425_v55 }
 0x1e3   : > { %s645_s27 = spop %644 }
 0x1e4   : > { %v434_v56 = vstv %s645_s27  ;;  %s647_s10 = spop %646 }
 0x1e5   : > { %435 = vst [vmem:[%s314_s15] sm:$0xff] %v434_v56  ;;  %v437_v57 = vstv %s647_s10 }
 0x1e6   : > { %438 = vst [vmem:[%s321_s11] sm:$0xff] %v437_v57 }
 0x1e7   : > { %780 = shalt.err (!%p777_p0)
}
 0x1e8   : > { %650 = dma.vmem_to_hbm [thread:$0]  (%p951_p9), %s458_s16, 128, %s460_s17, %s440_s28  }
 0x1e9   : > { %s445_s11 = scalar_lea.sflag [#allocation8], %s974_s25  ;;  %s795_s15 = sshra.s32 %s474_s24, 4  ;;  %s796_s15 = int_to_ptr.hbm [resolvable:$true] %s795_s15 }
 0x1ea   : > { %s797_s27 = scalar_lea.hbm %s796_s15, 8  ;;  %s801_s29 = scalar_lea.hbm %s1069_s5, 16 }
 0x1eb   : > { %p798_p1 = scmp.ne.s32.totalorder %s796_s15, %s797_s27  ;;  %p802_p4 = scmp.lt.s32.totalorder %s796_s15, %s1069_s5 }
 0x1ec   : > { %p803_p5 = scmp.lt.s32.totalorder %s801_s29, %s797_s27 }
 0x1ed   : > { %p799_p2 = pnand %p798_p1, %p951_p9 }
 0x1ee   : > { %p804_p6 = por %p803_p5, %p802_p4 }
 0x1ef   : > { %p800_p3 = pneg %p799_p2 }
 0x1f1   : > { %p805_p7 = pnand %p804_p6, %p800_p3 }
 0x1f3   : > { %808 = shalt.err (!%p805_p7)
}
 0x1f4   : > { %651 = dma.vmem_to_hbm [thread:$0]  (%p951_p9), %s1009_s12, 128, %s474_s24, %s445_s11  }
 0x1f5 PF: > { %s485_s25 = sand.u32 1, %s847_s18   ;;  %p659_p8 = pnand %p625_p12, %p958_p11 }
 0x1f6   : > { %s486_s16 = scalar_lea.sflag [#allocation5], %s485_s25 }
 0x1f7   : > { %p660_p10 = pneg %p659_p8 }
 0x1f9   : > { %838 = dma.done.wait (%p660_p10), %s486_s16, 128  }
 0x1fa   : > { %840 = vsyncadd (%p660_p10), %s486_s16, 4294967168  ;;  %s496_s17 = scalar_lea.sflag [#allocation8], %s485_s25 }
 0x1fb   : > { %842 = dma.done.wait (%p660_p10), %s496_s17, 128  }
 0x1fc   : > { %844 = vsyncadd (%p660_p10), %s496_s17, 4294967168  ;;  %s25_s23 = sadd.s32 1, %s867_s23   ;;  %s1076_s18 = smov %s851_s19 }
 0x1fd   : > { %p22_p13 = scmp.ge.s32.totalorder %s25_s23, 4   ;;  %s1077_s19 = smov %s855_s20 }
 0x1fe   : > { %s1078_s20 = smov %s956_s7  ;;  %s1079_s21 = smov %s863_s22 }
 0x1ff   : > { %s1080_s22 = smov %s1082_s26  ;;  %24 = sbr.rel (!%p22_p13) target bundleno = 10 (0xa), region = 119 }
 0x204   :  { %502 = vsyncpa [#allocation4], 1 }
 0x205   :  { %504 = vsyncpa [#allocation4 + $0x1], 1 }
 0x206   :  { %505 = vsyncpa [#allocation5], 1 }
 0x207   :  { %507 = vsyncpa [#allocation5 + $0x1], 1 }
 0x208   :  { %508 = vsyncpa [#allocation8], 1 }
 0x209   :  { %510 = vsyncpa [#allocation8 + $0x1], 1 }

</bundles_post_ra>
